<compile_context>
chip_gen: v7x
topology: tpu7x:2x2x1
jax: 0.10.0
libtpu: 0.0.40
codegen_flags: <defaults>
</compile_context>

<pallas_src>
import jax
import jax.numpy as jnp
from jax import lax
from jax.experimental import pallas as pl
from jax.experimental.pallas import tpu as pltpu


# ----------------------------- configuration --------------------------------
IN_SIZE = 32       # inputSize (flattened latent/state dim)
HIDDEN = 64        # config.agent.critic.hiddenSize
NUM_LAYERS = 2     # config.agent.critic.numLayers
OUT_SIZE = 2       # mean + logStd


def _round_up(n, m):
    return ((n + m - 1) // m) * m


def _elu(x):
    # ELU(alpha=1): x if x > 0 else exp(x) - 1   (exp goes to the EUP slot)
    return jnp.where(x > 0, x, jnp.exp(x) - 1.0)


# ------------------------------ Pallas kernel --------------------------------
def critic_kernel(x_ref,
                  w0_ref, b0_ref,
                  w1_ref, b1_ref,
                  wo_ref, bo_ref,
                  out_ref):
    """One batch tile of the MLP forward, computed feature-major.

    x_ref  : (TILE_B, IN)   native dtype (cast to bf16 in-kernel)
    w*_ref : bf16 weights in PyTorch (out, in) orientation, resident across grid
    b*_ref : f32 biases, shape (out, 1)
    out_ref: (2, TILE_B) f32 -> row 0 = mean, row 1 = exp(logStd) = std
    """
    xb = x_ref[...].astype(jnp.bfloat16)

    # layer 0: h0^T = W0 . x^T  -> (HIDDEN, TILE_B), lane-dense; f32 accumulate
    h = lax.dot_general(
        w0_ref[...], xb,
        dimension_numbers=(((1,), (1,)), ((), ())),
        preferred_element_type=jnp.float32,
    ) + b0_ref[...]
    h = _elu(h)

    # layer 1: h1^T = W1 . h0^T -> (HIDDEN, TILE_B)
    h = lax.dot_general(
        w1_ref[...], h.astype(jnp.bfloat16),
        dimension_numbers=(((1,), (0,)), ((), ())),
        preferred_element_type=jnp.float32,
    ) + b1_ref[...]
    h = _elu(h)

    # output head: (2, HIDDEN) . (HIDDEN, TILE_B) -> (2, TILE_B)
    out_t = lax.dot_general(
        wo_ref[...], h.astype(jnp.bfloat16),
        dimension_numbers=(((1,), (0,)), ((), ())),
        preferred_element_type=jnp.float32,
    ) + bo_ref[...]

    # chunk(2, dim=-1): row 0 is mean, row 1 is logStd -> std = exp(logStd)
    out_ref[0:1, :] = out_t[0:1, :]
    out_ref[1:2, :] = jnp.exp(out_t[1:2, :])


# ------------------------------ host wrapper ---------------------------------
def critic_forward(x, params, *, tile_b=2048):
    """Returns (mean, std) parameterizing Normal(mean, std), each (batch, 1)."""
    (w0, b0), (w1, b1), (wo, bo) = params
    batch, in_size = x.shape

    # Tile over batch in multiples of 128 lanes; clamp so small batches still
    # yield >= 2 grid steps (v7x has 2 TensorCores sharding the parallel axis).
    half = _round_up(pl.cdiv(batch, 2), 128)
    tile_b = max(128, min(tile_b, half))
    n_tiles = pl.cdiv(batch, tile_b)          # ragged last tile is fine (masked DMA)

    out = pl.pallas_call(
        critic_kernel,
        out_shape=jax.ShapeDtypeStruct((OUT_SIZE, batch), jnp.float32),
        grid=(n_tiles,),
        in_specs=[
            pl.BlockSpec((tile_b, in_size), lambda i: (i, 0)),   # x: tiled over batch
            pl.BlockSpec(w0.shape, lambda i: (0, 0)),            # weights/biases resident
            pl.BlockSpec(b0.shape, lambda i: (0, 0)),
            pl.BlockSpec(w1.shape, lambda i: (0, 0)),
            pl.BlockSpec(b1.shape, lambda i: (0, 0)),
            pl.BlockSpec(wo.shape, lambda i: (0, 0)),
            pl.BlockSpec(bo.shape, lambda i: (0, 0)),
        ],
        out_specs=pl.BlockSpec((OUT_SIZE, tile_b), lambda i: (0, i)),
        compiler_params=pltpu.CompilerParams(
            dimension_semantics=("parallel",)),
    )(x, w0, b0, w1, b1, wo, bo)

    mean = out[0][:, None]
    std = out[1][:, None]
    return mean, std


# -------------------------- deterministic init -------------------------------
def init_params(key):
    """PyTorch-Linear-style uniform(-1/sqrt(fan_in), 1/sqrt(fan_in)) init.

    All weights kept in PyTorch (out, in) orientation as bf16 (feature-major
    compute); biases are (out, 1) f32.
    """
    sizes = [IN_SIZE] + [HIDDEN] * NUM_LAYERS + [OUT_SIZE]
    params = []
    for i in range(len(sizes) - 1):
        fan_in, fan_out = sizes[i], sizes[i + 1]
        key, kw, kb = jax.random.split(key, 3)
        bound = 1.0 / (fan_in ** 0.5)
        w = jax.random.uniform(kw, (fan_out, fan_in), jnp.float32, -bound, bound)
        b = jax.random.uniform(kb, (fan_out, 1), jnp.float32, -bound, bound)
        params.append((w.astype(jnp.bfloat16), b))
    return params


def reference_forward(x, params):
    """Plain-JAX reference with identical casting, for correctness checking."""
    (w0, b0), (w1, b1), (wo, bo) = params
    h = _elu(lax.dot_general(w0, x.astype(jnp.bfloat16),
                             dimension_numbers=(((1,), (1,)), ((), ())),
                             preferred_element_type=jnp.float32) + b0)
    h = _elu(jnp.dot(w1, h.astype(jnp.bfloat16),
                     preferred_element_type=jnp.float32) + b1)
    out_t = jnp.dot(wo, h.astype(jnp.bfloat16),
                    preferred_element_type=jnp.float32) + bo
    return out_t[0][:, None], jnp.exp(out_t[1])[:, None]


# ---------------------------------- main --------------------------------------
if __name__ == "__main__":
    key = jax.random.PRNGKey(0)
    key, kx = jax.random.split(key)

    BATCH = 384  # small test batch; wrapper clamps tile_b to 256 -> 2-step grid
    x = jax.random.normal(kx, (BATCH, IN_SIZE), dtype=jnp.float32)
    params = init_params(key)

    mean, std = critic_forward(x, params)
    jax.block_until_ready((mean, std))

    mean_ref, std_ref = reference_forward(x, params)
    assert mean.shape == (BATCH, 1) and std.shape == (BATCH, 1)
    assert jnp.allclose(mean, mean_ref, atol=1e-3, rtol=1e-3)
    assert jnp.allclose(std, std_ref, atol=1e-3, rtol=1e-3)
    assert bool(jnp.all(std > 0))   # valid Normal scale

    print("KERNEL_OK")
</pallas_src>

<mosaic_0001>
module attributes {stable_mosaic.version = 11 : i64} {
  func.func @critic_kernel(%arg0: i32, %arg1: memref<256x32xf32, #tpu.memory_space<vmem>>, %arg2: memref<64x32xbf16, #tpu.memory_space<vmem>>, %arg3: memref<64x1xf32, #tpu.memory_space<vmem>>, %arg4: memref<64x64xbf16, #tpu.memory_space<vmem>>, %arg5: memref<64x1xf32, #tpu.memory_space<vmem>>, %arg6: memref<2x64xbf16, #tpu.memory_space<vmem>>, %arg7: memref<2x1xf32, #tpu.memory_space<vmem>>, %arg8: memref<2x256xf32, #tpu.memory_space<vmem>>) attributes {dimension_semantics = [#tpu.dimension_semantics<parallel>], iteration_bounds = array<i64: 2>, scalar_prefetch = 0 : i64, scratch_operands = 0 : i64, tpu.core_type = #tpu.core_type<tc>, window_params = [{transform_indices = @transform_0, window_bounds = array<i64: 256, 32>}, {pipeline_mode = #tpu.pipeline_mode<synchronous>, transform_indices = @transform_1, window_bounds = array<i64: 64, 32>}, {pipeline_mode = #tpu.pipeline_mode<synchronous>, transform_indices = @transform_2, window_bounds = array<i64: 64, 1>}, {pipeline_mode = #tpu.pipeline_mode<synchronous>, transform_indices = @transform_3, window_bounds = array<i64: 64, 64>}, {pipeline_mode = #tpu.pipeline_mode<synchronous>, transform_indices = @transform_4, window_bounds = array<i64: 64, 1>}, {pipeline_mode = #tpu.pipeline_mode<synchronous>, transform_indices = @transform_5, window_bounds = array<i64: 2, 64>}, {pipeline_mode = #tpu.pipeline_mode<synchronous>, transform_indices = @transform_6, window_bounds = array<i64: 2, 1>}, {transform_indices = @transform_7, window_bounds = array<i64: 2, 256>}]} {
    %c0 = arith.constant 0 : index
    %c0_0 = arith.constant 0 : index
    %0 = vector.load %arg1[%c0, %c0_0] : memref<256x32xf32, #tpu.memory_space<vmem>>, vector<256x32xf32>
    %1 = arith.truncf %0 : vector<256x32xf32> to vector<256x32xbf16>
    %c0_1 = arith.constant 0 : index
    %c0_2 = arith.constant 0 : index
    %2 = vector.load %arg2[%c0_1, %c0_2] : memref<64x32xbf16, #tpu.memory_space<vmem>>, vector<64x32xbf16>
    %cst = arith.constant dense<0.000000e+00> : vector<64x256xf32>
    %3 = tpu.matmul %2, %1, %cst {dimension_numbers = #tpu.dot_dimension_numbers<[1], [1], [0], [0], [0, 0, 1, 0], [], []>} : vector<64x32xbf16>, vector<256x32xbf16>, vector<64x256xf32> -> vector<64x256xf32>
    %c0_3 = arith.constant 0 : index
    %c0_4 = arith.constant 0 : index
    %4 = vector.load %arg3[%c0_3, %c0_4] : memref<64x1xf32, #tpu.memory_space<vmem>>, vector<64x1xf32>
    %5 = vector.broadcast %4 : vector<64x1xf32> to vector<64x256xf32>
    %6 = arith.addf %3, %5 : vector<64x256xf32>
    %cst_5 = arith.constant 0.000000e+00 : f32
    %7 = vector.broadcast %cst_5 : f32 to vector<64x256xf32>
    %8 = arith.cmpf ogt, %6, %7 : vector<64x256xf32>
    %9 = math.exp %6 : vector<64x256xf32>
    %cst_6 = arith.constant 1.000000e+00 : f32
    %10 = vector.broadcast %cst_6 : f32 to vector<64x256xf32>
    %11 = arith.subf %9, %10 : vector<64x256xf32>
    %12 = arith.select %8, %6, %11 : vector<64x256xi1>, vector<64x256xf32>
    %c0_7 = arith.constant 0 : index
    %c0_8 = arith.constant 0 : index
    %13 = vector.load %arg4[%c0_7, %c0_8] : memref<64x64xbf16, #tpu.memory_space<vmem>>, vector<64x64xbf16>
    %14 = arith.truncf %12 : vector<64x256xf32> to vector<64x256xbf16>
    %cst_9 = arith.constant dense<0.000000e+00> : vector<64x256xf32>
    %15 = tpu.matmul %13, %14, %cst_9 {dimension_numbers = #tpu.dot_dimension_numbers<[1], [0], [0], [1], [0, 0, 1, 1], [], []>} : vector<64x64xbf16>, vector<64x256xbf16>, vector<64x256xf32> -> vector<64x256xf32>
    %c0_10 = arith.constant 0 : index
    %c0_11 = arith.constant 0 : index
    %16 = vector.load %arg5[%c0_10, %c0_11] : memref<64x1xf32, #tpu.memory_space<vmem>>, vector<64x1xf32>
    %17 = vector.broadcast %16 : vector<64x1xf32> to vector<64x256xf32>
    %18 = arith.addf %15, %17 : vector<64x256xf32>
    %cst_12 = arith.constant 0.000000e+00 : f32
    %19 = vector.broadcast %cst_12 : f32 to vector<64x256xf32>
    %20 = arith.cmpf ogt, %18, %19 : vector<64x256xf32>
    %21 = math.exp %18 : vector<64x256xf32>
    %cst_13 = arith.constant 1.000000e+00 : f32
    %22 = vector.broadcast %cst_13 : f32 to vector<64x256xf32>
    %23 = arith.subf %21, %22 : vector<64x256xf32>
    %24 = arith.select %20, %18, %23 : vector<64x256xi1>, vector<64x256xf32>
    %c0_14 = arith.constant 0 : index
    %c0_15 = arith.constant 0 : index
    %25 = vector.load %arg6[%c0_14, %c0_15] : memref<2x64xbf16, #tpu.memory_space<vmem>>, vector<2x64xbf16>
    %26 = arith.truncf %24 : vector<64x256xf32> to vector<64x256xbf16>
    %cst_16 = arith.constant dense<0.000000e+00> : vector<2x256xf32>
    %27 = tpu.matmul %25, %26, %cst_16 {dimension_numbers = #tpu.dot_dimension_numbers<[1], [0], [0], [1], [0, 0, 1, 1], [], []>} : vector<2x64xbf16>, vector<64x256xbf16>, vector<2x256xf32> -> vector<2x256xf32>
    %c0_17 = arith.constant 0 : index
    %c0_18 = arith.constant 0 : index
    %28 = vector.load %arg7[%c0_17, %c0_18] : memref<2x1xf32, #tpu.memory_space<vmem>>, vector<2x1xf32>
    %29 = vector.broadcast %28 : vector<2x1xf32> to vector<2x256xf32>
    %30 = arith.addf %27, %29 : vector<2x256xf32>
    %31 = vector.extract_strided_slice %30 {offsets = [0, 0], sizes = [1, 256], strides = [1, 1]} : vector<2x256xf32> to vector<1x256xf32>
    %c0_19 = arith.constant 0 : index
    %c0_20 = arith.constant 0 : index
    %32 = vector.load %arg8[%c0_19, %c0_20] : memref<2x256xf32, #tpu.memory_space<vmem>>, vector<1x256xf32>
    tpu.vector_store %arg8[%c0_19, %c0_20], %31 {strides = array<i32>} : memref<2x256xf32, #tpu.memory_space<vmem>>, vector<1x256xf32>,
    %33 = vector.extract_strided_slice %30 {offsets = [1, 0], sizes = [1, 256], strides = [1, 1]} : vector<2x256xf32> to vector<1x256xf32>
    %34 = math.exp %33 : vector<1x256xf32>
    %c1 = arith.constant 1 : index
    %c0_21 = arith.constant 0 : index
    %35 = vector.load %arg8[%c1, %c0_21] : memref<2x256xf32, #tpu.memory_space<vmem>>, vector<1x256xf32>
    tpu.vector_store %arg8[%c1, %c0_21], %34 {strides = array<i32>} : memref<2x256xf32, #tpu.memory_space<vmem>>, vector<1x256xf32>,
    return
  }
  func.func @transform_0(%arg0: i32) -> (i32, i32) {
    %c0_i32 = arith.constant 0 : i32
    %c0_i32_0 = arith.constant 0 : i32
    return %arg0, %c0_i32 : i32, i32
  }
  func.func @transform_1(%arg0: i32) -> (i32, i32) {
    %c0_i32 = arith.constant 0 : i32
    %c0_i32_0 = arith.constant 0 : i32
    %c0_i32_1 = arith.constant 0 : i32
    return %c0_i32, %c0_i32_0 : i32, i32
  }
  func.func @transform_2(%arg0: i32) -> (i32, i32) {
    %c0_i32 = arith.constant 0 : i32
    %c0_i32_0 = arith.constant 0 : i32
    %c0_i32_1 = arith.constant 0 : i32
    return %c0_i32, %c0_i32_0 : i32, i32
  }
  func.func @transform_3(%arg0: i32) -> (i32, i32) {
    %c0_i32 = arith.constant 0 : i32
    %c0_i32_0 = arith.constant 0 : i32
    %c0_i32_1 = arith.constant 0 : i32
    return %c0_i32, %c0_i32_0 : i32, i32
  }
  func.func @transform_4(%arg0: i32) -> (i32, i32) {
    %c0_i32 = arith.constant 0 : i32
    %c0_i32_0 = arith.constant 0 : i32
    %c0_i32_1 = arith.constant 0 : i32
    return %c0_i32, %c0_i32_0 : i32, i32
  }
  func.func @transform_5(%arg0: i32) -> (i32, i32) {
    %c0_i32 = arith.constant 0 : i32
    %c0_i32_0 = arith.constant 0 : i32
    %c0_i32_1 = arith.constant 0 : i32
    return %c0_i32, %c0_i32_0 : i32, i32
  }
  func.func @transform_6(%arg0: i32) -> (i32, i32) {
    %c0_i32 = arith.constant 0 : i32
    %c0_i32_0 = arith.constant 0 : i32
    %c0_i32_1 = arith.constant 0 : i32
    return %c0_i32, %c0_i32_0 : i32, i32
  }
  func.func @transform_7(%arg0: i32) -> (i32, i32) {
    %c0_i32 = arith.constant 0 : i32
    %c0_i32_0 = arith.constant 0 : i32
    return %c0_i32, %arg0 : i32, i32
  }
}

</mosaic_0001>

<bundles_post_ra>
// kernel: tpu_custom_call.1
= control target key start
LH: loop header
LB: loop body
LE: loop exit
PB: predicated region body
PF: predicated region fallthrough
CT: control target
= control target key end

     0   :  { %12 = vsyncpa [#allocation3], 0  ;;  %s1776_s0 = inlined_call_operand.vmem [shape: f32[384,32], index: 0, kind: input, shape index: {}]   ;;  %s1777_s1 = inlined_call_operand.vmem [shape: bf16[64,32], index: 1, kind: input, shape index: {}]   ;;  %s1778_s2 = inlined_call_operand.vmem [shape: f32[64,1], index: 2, kind: input, shape index: {}]   ;;  %s1779_s3 = inlined_call_operand.vmem [shape: bf16[64,64], index: 3, kind: input, shape index: {}]   ;;  %s1780_s4 = inlined_call_operand.vmem [shape: f32[64,1], index: 4, kind: input, shape index: {}]   ;;  %s1781_s5 = inlined_call_operand.vmem [shape: bf16[2,64], index: 5, kind: input, shape index: {}]   ;;  %s1782_s6 = inlined_call_operand.vmem [shape: f32[2,1], index: 6, kind: input, shape index: {}]   ;;  %s1783_s7 = inlined_call_operand.hbm [shape: f32[2,384], index: 7, kind: output, shape index: {}]  }
   0x1   :  { %14 = vsyncpa [#allocation3 + $0x1], 0  ;;  %s1404_s24 = smov 0   ;;  %s1406_s25 = smov 0  }
   0x2   :  { %s1408_s26 = smov 0   ;;  %s1410_s27 = smov 0  }
   0x3 LB: > { %s1425_s28 = sadd.s32 4294967295, %s1359_s27   ;;  %s1080_s29 = sadd.s32 4294967294, %s1359_s27   ;;  %s1359_s27 = sphi %s1410_s27, %s1789_s27   ;;  %s1355_s26 = sphi %s1408_s26, %s1788_s26   ;;  %s1351_s25 = sphi %s1406_s25, %s1787_s25   ;;  %s1347_s24 = sphi %s1404_s24, %s1786_s24  }
   0x4   : > { %s1429_s30 = sadd.s32 1, %s1359_s27   ;;  %s179_s8 = sadd.s32 1, %s1355_s26 }
   0x5   : > { %s176_s9 = ssub.s32 %s1359_s27, %s1429_s30  ;;  %p189_p0 = scmp.ne.s32.totalorder %s1355_s26, %s1351_s25 }
   0x6   : > { %p177_p1 = scmp.eq.s32.totalorder %s176_s9, 0  ;;  %p190_p2 = scmp.eq.s32.totalorder %s1425_s28, 1 }
   0x7   : > { %p195_p3 = scmp.ne.s32.totalorder %s1351_s25, %s1347_s24  ;;  %p196_p4 = scmp.eq.s32.totalorder %s1080_s29, 1 }
   0x8   : > { %s1440_s10 = scalar_select %p177_p1, %s1355_s26, %s179_s8  }
   0x9   : > { %p1442_p5 = por %p190_p2, %p189_p0  ;;  %p1446_p6 = por %p196_p4, %p195_p3 }
   0xa   : > { %p1083_p7 = scmp.ge.s32.totalorder %s1359_s27, 1  ;;  %p249_p8 = scmp.lt.s32.totalorder %s1359_s27, 3 }
   0xc   : > { %p250_p9 = pnand %p1083_p7, %p249_p8 }
   0xd   : > { %s1085_s13 = sshll.u32 (!%p250_p9), %s1425_s28, 5  ;;  %v1456_v0 = vld [vmem:[%s1777_s1] sm:$0xff] (!%p250_p9)   ;;  %vm429_vm0 = vcmask (!%p250_p9), 261120   ;;  %v1361_v1 = vmov (!%p250_p9), 0   ;;  %v363_v3 = vld [vmem:[%s1778_s2 + $0x10] sm:$0xff] (!%p250_p9)  ;;  %v362_v4 = vld [vmem:[%s1778_s2 + $0x8] sm:$0xff] (!%p250_p9) }
   0xe   : > { %253 = sbr.rel (%p250_p9) target bundleno = 882 (0x372), region = 48  ;;  %p290_p10 = scmp.lt.s32.totalorder (!%p250_p9), %s1085_s13, 47  ;;  %1163 = vmatprep.mubr.msk.bf16.mxu0 (!%p250_p9), %vm429_vm0, %v1456_v0  ;;  %1219 = vset.pattern.permute.xlu0 (!%p250_p9), %v1361_v1  ;;  %v361_v2 = vld [vmem:[%s1778_s2] sm:$0xff] (!%p250_p9)  ;;  %v364_v5 = vld [vmem:[%s1778_s2 + $0x18] sm:$0xff] (!%p250_p9)  ;;  %v366_v19 = vld [vmem:[%s1778_s2 + $0x28] sm:$0xff] (!%p250_p9) }
   0xf   : > { %1220 = vset.pattern.permute.xlu1 (!%p250_p9), %v1361_v1  ;;  %772 = vmatprep.mubr.bf16.mxu1 (!%p250_p9), %v1361_v1  ;;  %v365_v17 = vld [vmem:[%s1778_s2 + $0x20] sm:$0xff] (!%p250_p9)  ;;  %v367_v23 = vld [vmem:[%s1778_s2 + $0x30] sm:$0xff] (!%p250_p9)  ;;  %v368_v26 = vld [vmem:[%s1778_s2 + $0x38] sm:$0xff] (!%p250_p9)  ;;  %s282_s16 = sand.u32 (!%p250_p9), 1, %s1351_s25  }
  0x10   : > { %371 = vperm.xlu0 (!%p250_p9), %1219, %v361_v2   ;;  %381 = vperm.xlu1 (!%p250_p9), %1220, %v363_v3   ;;  %v659_v29 = vld [vmem:[%s1780_s4] sm:$0xff] (!%p250_p9)  ;;  %v660_v30 = vld [vmem:[%s1780_s4 + $0x8] sm:$0xff] (!%p250_p9)  ;;  %v661_v33 = vld [vmem:[%s1780_s4 + $0x10] sm:$0xff] (!%p250_p9)  ;;  %s1084_s17 = sshll.u32 (!%p250_p9), %s282_s16, 2 }
  0x11   : > { %v662_v35 = vld [vmem:[%s1780_s4 + $0x18] sm:$0xff] (!%p250_p9)  ;;  %v663_v40 = vld [vmem:[%s1780_s4 + $0x20] sm:$0xff] (!%p250_p9)  ;;  %v664_v41 = vld [vmem:[%s1780_s4 + $0x28] sm:$0xff] (!%p250_p9) }
  0x12   : > { %v665_v45 = vld [vmem:[%s1780_s4 + $0x30] sm:$0xff] (!%p250_p9)  ;;  %v666_v46 = vld [vmem:[%s1780_s4 + $0x38] sm:$0xff] (!%p250_p9)  ;;  %v902_v51 = vld [vmem:[%s1782_s6] sm:$0x3] (!%p250_p9) }
  0x14   : > { %376 = vperm.xlu0 (!%p250_p9), %1219, %v362_v4   ;;  %386 = vperm.xlu1 (!%p250_p9), %1220, %v364_v5  }
  0x15   : > { %s1791_s13 = smov (!%p290_p10, %s1085_s13), 47  ;;  %s1138_s19 = sshll.u32 (%p1442_p5), %s1425_s28, 1 }
  0x16   : > { %s1086_s18 = sshll.u32 %s1791_s13, 3  ;;  %s1009_s20 = ssub.s32 (%p1442_p5), 3, %s1138_s19 }
  0x17   : > { %s1472_s23 = scalar_lea.vmem %s1776_s0, %s1086_s18  ;;  %s1722_s18 = scalar_lea.sflag [#allocation3], %s282_s16 }
  0x18   : > { %v321_v6 = vld [vmem:[%s1472_s23 + $0x80] sm:$0xff]  ;;  %v322_v7 = vld [vmem:[%s1472_s23 + $0x88] sm:$0xff]  ;;  %v323_v11 = vld [vmem:[%s1472_s23 + $0x90] sm:$0xff]  ;;  %391 = vperm.xlu0 %1219, %v365_v17   ;;  %396 = vperm.xlu1 %1220, %v366_v19   ;;  %p1010_p11 = scmp.lt.s32.totalorder (%p1442_p5), %s1009_s20, 2 }
  0x19   : > { %v305_v8 = vld [vmem:[%s1472_s23] sm:$0xff]  ;;  %v345_v9 = vpack.c.bf16 %v322_v7, %v321_v6  ;;  %v306_v10 = vld [vmem:[%s1472_s23 + $0x8] sm:$0xff]  ;;  %v324_v12 = vld [vmem:[%s1472_s23 + $0x98] sm:$0xff] }
  0x1a   : > { %v337_v13 = vpack.c.bf16 %v306_v10, %v305_v8  ;;  %v346_v14 = vpack.c.bf16 %v324_v12, %v323_v11  ;;  %v307_v15 = vld [vmem:[%s1472_s23 + $0x10] sm:$0xff]  ;;  %v308_v16 = vld [vmem:[%s1472_s23 + $0x18] sm:$0xff]  ;;  %v325_v21 = vld [vmem:[%s1472_s23 + $0xa0] sm:$0xff] }
  0x1b   : > { %1171 = vmatprep.subr.msk.bf16.mxu0 %vm429_vm0, %v345_v9  ;;  %v338_v20 = vpack.c.bf16 %v308_v16, %v307_v15  ;;  %v326_v22 = vld [vmem:[%s1472_s23 + $0xa8] sm:$0xff]  ;;  %v309_v27 = vld [vmem:[%s1472_s23 + $0x20] sm:$0xff]  ;;  %v327_v31 = vld [vmem:[%s1472_s23 + $0xb0] sm:$0xff] }
  0x1c   : > { %v443_v18 = vsel %vm429_vm0, %v337_v13, 0  ;;  %v347_v25 = vpack.c.bf16 %v326_v22, %v325_v21  ;;  %401 = vperm.xlu0 %1219, %v367_v23   ;;  %v310_v28 = vld [vmem:[%s1472_s23 + $0x28] sm:$0xff]  ;;  %406 = vperm.xlu1 %1220, %v368_v26   ;;  %v328_v32 = vld [vmem:[%s1472_s23 + $0xb8] sm:$0xff]  ;;  %v311_v38 = vld [vmem:[%s1472_s23 + $0x30] sm:$0xff] }
  0x1d   : > { %1148 = vmatpush3.bf16.xpose.msra.mxu0 %v443_v18  ;;  %v446_v24 = vsel %vm429_vm0, %v338_v20, 0  ;;  %v339_v34 = vpack.c.bf16 %v310_v28, %v309_v27  ;;  %v348_v37 = vpack.c.bf16 %v328_v32, %v327_v31  ;;  %v312_v39 = vld [vmem:[%s1472_s23 + $0x38] sm:$0xff]  ;;  %v329_v43 = vld [vmem:[%s1472_s23 + $0xc0] sm:$0xff]  ;;  %v330_v44 = vld [vmem:[%s1472_s23 + $0xc8] sm:$0xff] }
  0x1e   : > { %1172 = vmatprep.subr.msk.bf16.mxu0 %vm429_vm0, %v346_v14  ;;  %v340_v42 = vpack.c.bf16 %v312_v39, %v311_v38  ;;  %v349_v48 = vpack.c.bf16 %v330_v44, %v329_v43  ;;  %v313_v49 = vld [vmem:[%s1472_s23 + $0x40] sm:$0xff]  ;;  %v314_v50 = vld [vmem:[%s1472_s23 + $0x48] sm:$0xff]  ;;  %v331_v53 = vld [vmem:[%s1472_s23 + $0xd0] sm:$0xff] }
  0x1f   : > { %v449_v36 = vsel %vm429_vm0, %v339_v34, 0  ;;  %v341_v52 = vpack.c.bf16 %v314_v50, %v313_v49  ;;  %v332_v54 = vld [vmem:[%s1472_s23 + $0xd8] sm:$0xff]  ;;  %v315_v57 = vld [vmem:[%s1472_s23 + $0x50] sm:$0xff]  ;;  %v333_v60 = vld [vmem:[%s1472_s23 + $0xe0] sm:$0xff] }
  0x20   : > { %669 = vperm.xlu0 %1219, %v659_v29   ;;  %674 = vperm.xlu1 %1220, %v660_v30   ;;  %v452_v47 = vsel %vm429_vm0, %v340_v42, 0  ;;  %v350_v56 = vpack.c.bf16 %v332_v54, %v331_v53  ;;  %v316_v58 = vld [vmem:[%s1472_s23 + $0x58] sm:$0xff]  ;;  %v334_v61 = vld [vmem:[%s1472_s23 + $0xe8] sm:$0xff]  ;;  %v317_v2 = vld [vmem:[%s1472_s23 + $0x60] sm:$0xff] }
  0x21   : > { %v455_v55 = vsel %vm429_vm0, %v341_v52, 0  ;;  %v342_v59 = vpack.c.bf16 %v316_v58, %v315_v57  ;;  %v351_v63 = vpack.c.bf16 %v334_v61, %v333_v60  ;;  %v318_v3 = vld [vmem:[%s1472_s23 + $0x68] sm:$0xff]  ;;  %v335_v5 = vld [vmem:[%s1472_s23 + $0xf0] sm:$0xff]  ;;  %v336_v6 = vld [vmem:[%s1472_s23 + $0xf8] sm:$0xff] }
  0x22   : > { %v343_v4 = vpack.c.bf16 %v318_v3, %v317_v2  ;;  %v352_v8 = vpack.c.bf16 %v336_v6, %v335_v5  ;;  %v319_v9 = vld [vmem:[%s1472_s23 + $0x70] sm:$0xff]  ;;  %v320_v10 = vld [vmem:[%s1472_s23 + $0x78] sm:$0xff]  ;;  %v1222_v13 = vld [vmem:[%s1777_s1 + $0x8] sm:$0xff]   ;;  %s284_s23 = scalar_lea.vmem [#allocation2], %s1084_s17 }
  0x23   : > { %v458_v62 = vsel %vm429_vm0, %v342_v59, 0  ;;  %v344_v11 = vpack.c.bf16 %v320_v10, %v319_v9  ;;  %v1223_v14 = vld [vmem:[%s1777_s1 + $0x10] sm:$0xff]   ;;  %v1224_v15 = vld [vmem:[%s1777_s1 + $0x18] sm:$0xff]  }
  0x24   : > { %679 = vperm.xlu0 %1219, %v661_v33   ;;  %684 = vperm.xlu1 %1220, %v662_v35   ;;  %v461_v7 = vsel %vm429_vm0, %v343_v4, 0 }
  0x25   : > { %1150 = vmatpush3.bf16.xpose.msra.mxu0 %v446_v24  ;;  %v464_v12 = vsel %vm429_vm0, %v344_v11, 0 }
  0x26   : > { %1173 = vmatprep.subr.msk.bf16.mxu0 %vm429_vm0, %v347_v25 }
  0x28   : > { %689 = vperm.xlu0 %1219, %v663_v40   ;;  %694 = vperm.xlu1 %1220, %v664_v41  }
  0x2c   : > { %699 = vperm.xlu0 %1219, %v665_v45   ;;  %704 = vperm.xlu1 %1220, %v666_v46  }
  0x2d   : > { %1152 = vmatpush3.bf16.xpose.msra.mxu0 %v449_v36 }
  0x2e   : > { %1174 = vmatprep.subr.msk.bf16.mxu0 %vm429_vm0, %v348_v37 }
  0x30   : > { %905 = vperm.xlu0 %1219, %v902_v51  }
  0x35   : > { %1154 = vmatpush3.bf16.xpose.msra.mxu0 %v452_v47 }
  0x36   : > { %1175 = vmatprep.subr.msk.bf16.mxu0 %vm429_vm0, %v349_v48 }
  0x3d   : > { %1156 = vmatpush3.bf16.xpose.msra.mxu0 %v455_v55 }
  0x3e   : > { %1176 = vmatprep.subr.msk.bf16.mxu0 %vm429_vm0, %v350_v56 }
  0x45   : > { %1158 = vmatpush3.bf16.xpose.msra.mxu0 %v458_v62 }
  0x46   : > { %1177 = vmatprep.subr.msk.bf16.mxu0 %vm429_vm0, %v351_v63 }
  0x4d   : > { %1160 = vmatpush3.bf16.xpose.msra.mxu0 %v461_v7 }
  0x4e   : > { %1178 = vmatprep.subr.msk.bf16.mxu0 %vm429_vm0, %v352_v8 }
  0x55   : > { %1162 = vmatpush3.bf16.xpose.msra.mxu0 %v464_v12 }
  0x5c   : > { %1164 = vmatmul.mubr.msk.bf16.vlgmr.msra.gmra.mrb[0].mxu0 %vm429_vm0, %v1456_v0 }
  0x5d   : > { %1165 = vmatprep.mubr.msk.bf16.mxu0 %vm429_vm0, %v1222_v13 }
  0x64   : > { %1166 = vmatmul.mubr.msk.bf16.gmra.mrb[4].mxu0 %vm429_vm0, %v1222_v13 }
  0x65   : > { %1167 = vmatprep.mubr.msk.bf16.mxu0 %vm429_vm0, %v1223_v14 }
  0x6c   : > { %1168 = vmatmul.mubr.msk.bf16.gmra.mrb[8].mxu0 %vm429_vm0, %v1223_v14 }
  0x6d   : > { %1169 = vmatprep.mubr.msk.bf16.mxu0 %vm429_vm0, %v1224_v15 }
  0x74   : > { %1170 = vmatmul.mubr.msk.bf16.gmra.mrb[12].mxu0 %vm429_vm0, %v1224_v15 }
  0x8f   : > { %v372_v0 = vpop.permute.xlu0 %371  ;;  %v382_v25 = vpop.permute.xlu1 %381 }
  0x93   : > { %v377_v19 = vpop.permute.xlu0 %376  ;;  %v387_v33 = vpop.permute.xlu1 %386 }
  0x97   : > { %v392_v45 = vpop.permute.xlu0 %391  ;;  %v397_v52 = vpop.permute.xlu1 %396 }
  0x9b   : > { %v402_v10 = vpop.permute.xlu0 %401 }
 0x12f   : > { %v524_v16 = vpop.f32.mrb[0].mxu0 }
 0x130   : > { %v1584_v17 = vadd.f32 %v524_v16, %v372_v0  ;;  %v526_v18 = vpop.f32.mrb[1].mxu0 }
 0x131   : > { %v527_v20 = vadd.f32 %v526_v18, %v372_v0  ;;  %v528_v21 = vpop.f32.mrb[2].mxu0  ;;  %v407_v18 = vpop.permute.xlu1 %406 }
 0x132   : > { %v579_v22 = vmul.f32 1.442695, %v1584_v17  ;;  %v1587_v23 = vadd.f32 %v528_v21, %v377_v19  ;;  %v530_v24 = vpop.f32.mrb[3].mxu0  ;;  %vm563_vm1 = vcmp.gt.f32.partialorder %v1584_v17, 0.0 }
 0x133   : > { %v581_v26 = vmul.f32 1.442695, %v527_v20  ;;  %v531_v27 = vadd.f32 %v530_v24, %v377_v19  ;;  %vm564_vm2 = vcmp.gt.f32.partialorder %v527_v20, 0.0 }
 0x134   : > { %1229 = vpow2.f32 %v579_v22  ;;  %v583_v28 = vmul.f32 1.442695, %v1587_v23  ;;  %vm565_vm4 = vcmp.gt.f32.partialorder %v1587_v23, 0.0 }
 0x135   : > { %1231 = vpow2.f32 %v581_v26  ;;  %v585_v29 = vmul.f32 1.442695, %v531_v27  ;;  %vm566_vm3 = vcmp.gt.f32.partialorder %v531_v27, 0.0 }
 0x136   : > { %1233 = vpow2.f32 %v583_v28 }
 0x137   : > { %1235 = vpow2.f32 %v585_v29  ;;  %v534_v30 = vpop.f32.mrb[4].mxu0 }
 0x138   : > { %v1590_v31 = vadd.f32 %v534_v30, %v382_v25  ;;  %v536_v32 = vpop.f32.mrb[5].mxu0 }
 0x139   : > { %v1592_v34 = vadd.f32 %v536_v32, %v382_v25  ;;  %v538_v35 = vpop.f32.mrb[6].mxu0 }
 0x13a   : > { %v587_v36 = vmul.f32 1.442695, %v1590_v31  ;;  %v1595_v37 = vadd.f32 %v538_v35, %v387_v33  ;;  %v540_v38 = vpop.f32.mrb[7].mxu0  ;;  %vm567_vm5 = vcmp.gt.f32.partialorder %v1590_v31, 0.0 }
 0x13b   : > { %v589_v39 = vmul.f32 1.442695, %v1592_v34  ;;  %v1598_v40 = vadd.f32 %v540_v38, %v387_v33  ;;  %vm568_vm6 = vcmp.gt.f32.partialorder %v1592_v34, 0.0 }
 0x13c   : > { %1237 = vpow2.f32 %v587_v36  ;;  %v591_v41 = vmul.f32 1.442695, %v1595_v37  ;;  %vm569_vm8 = vcmp.gt.f32.partialorder %v1595_v37, 0.0 }
 0x13d   : > { %1239 = vpow2.f32 %v589_v39  ;;  %v593_v42 = vmul.f32 1.442695, %v1598_v40  ;;  %vm570_vm7 = vcmp.gt.f32.partialorder %v1598_v40, 0.0 }
 0x13e   : > { %v1230_v43 = vpop.eup %1229  ;;  %1241 = vpow2.f32 %v591_v41 }
 0x13f   : > { %v1232_v44 = vpop.eup %1231  ;;  %1243 = vpow2.f32 %v593_v42  ;;  %v544_v46 = vpop.f32.mrb[8].mxu0  ;;  %v1095_v55 = vadd.f32 -1.0, %v1230_v43 }
 0x140   : > { %v1234_v47 = vpop.eup %1233  ;;  %v1602_v48 = vadd.f32 %v544_v46, %v392_v45  ;;  %v546_v49 = vpop.f32.mrb[9].mxu0  ;;  %v1096_v50 = vadd.f32 -1.0, %v1232_v44 }
 0x141   : > { %v1236_v51 = vpop.eup %1235  ;;  %v1604_v53 = vadd.f32 %v546_v49, %v392_v45  ;;  %v548_v54 = vpop.f32.mrb[10].mxu0  ;;  %v1097_v60 = vadd.f32 -1.0, %v1234_v47  ;;  %v627_v7 = vsel %vm563_vm1, %v1584_v17, %v1095_v55  ;;  %vm727_vm1 = vcmask 523264  }
 0x142   : > { %v595_v56 = vmul.f32 1.442695, %v1602_v48  ;;  %v1608_v57 = vadd.f32 %v548_v54, %v397_v52  ;;  %v550_v58 = vpop.f32.mrb[11].mxu0  ;;  %v1098_v59 = vadd.f32 -1.0, %v1236_v51  ;;  %v628_v2 = vsel %vm564_vm2, %v527_v20, %v1096_v50 }
 0x143   : > { %v597_v61 = vmul.f32 1.442695, %v1604_v53  ;;  %v1611_v62 = vadd.f32 %v550_v58, %v397_v52  ;;  %v629_v8 = vsel %vm565_vm4, %v1587_v23, %v1097_v60  ;;  %vm571_vm9 = vcmp.gt.f32.partialorder %v1602_v48, 0.0 }
 0x144   : > { %1245 = vpow2.f32 %v595_v56  ;;  %v599_v63 = vmul.f32 1.442695, %v1608_v57  ;;  %v630_v3 = vsel %vm566_vm3, %v531_v27, %v1098_v59  ;;  %v651_v12 = vpack.c.bf16 %v629_v8, %v627_v7 }
 0x145   : > { %1247 = vpow2.f32 %v597_v61  ;;  %v601_v4 = vmul.f32 1.442695, %v1611_v62  ;;  %v652_v5 = vpack.c.bf16 %v630_v3, %v628_v2  ;;  %vm573_vm10 = vcmp.gt.f32.partialorder %v1608_v57, 0.0  ;;  %v1225_v2 = vld [vmem:[%s1779_s3] sm:$0xff]   ;;  %v1226_v3 = vld [vmem:[%s1779_s3 + $0x8] sm:$0xff]  }
 0x146   : > { %v1238_v6 = vpop.eup %1237  ;;  %1249 = vpow2.f32 %v599_v63  ;;  %vm572_vm11 = vcmp.gt.f32.partialorder %v1604_v53, 0.0  ;;  %vm574_vm12 = vcmp.gt.f32.partialorder %v1611_v62, 0.0 }
 0x147   : > { %v1240_v9 = vpop.eup %1239  ;;  %1251 = vpow2.f32 %v601_v4  ;;  %v554_v11 = vpop.f32.mrb[12].mxu0  ;;  %740 = vmatprep.subr.bf16.mxu1 %v652_v5  ;;  %v1099_v19 = vadd.f32 -1.0, %v1238_v6  ;;  %v1227_v4 = vld [vmem:[%s1779_s3 + $0x10] sm:$0xff]   ;;  %v1228_v5 = vld [vmem:[%s1779_s3 + $0x18] sm:$0xff]  }
 0x148   : > { %v1242_v13 = vpop.eup %1241  ;;  %v1100_v14 = vadd.f32 -1.0, %v1240_v9  ;;  %v1620_v15 = vadd.f32 %v554_v11, %v402_v10  ;;  %v556_v0 = vpop.f32.mrb[13].mxu0  ;;  %741 = vmatpush1.bf16.msra.mxu1 %v651_v12 }
 0x149   : > { %v1244_v16 = vpop.eup %1243  ;;  %v557_v20 = vadd.f32 %v556_v0, %v402_v10  ;;  %v558_v17 = vpop.f32.mrb[14].mxu0  ;;  %v1101_v21 = vadd.f32 -1.0, %v1242_v13  ;;  %v631_v36 = vsel %vm567_vm5, %v1590_v31, %v1099_v19 }
 0x14a   : > { %v1102_v22 = vadd.f32 -1.0, %v1244_v16  ;;  %v603_v23 = vmul.f32 1.442695, %v1620_v15  ;;  %v559_v24 = vadd.f32 %v558_v17, %v407_v18  ;;  %v560_v25 = vpop.f32.mrb[15].mxu0  ;;  %v632_v29 = vsel %vm568_vm6, %v1592_v34, %v1100_v14  ;;  %v670_v6 = vpop.permute.xlu0 %669 }
 0x14b   : > { %v605_v26 = vmul.f32 1.442695, %v557_v20  ;;  %v561_v27 = vadd.f32 %v560_v25, %v407_v18  ;;  %v633_v38 = vsel %vm569_vm8, %v1595_v37, %v1101_v21  ;;  %vm575_vm13 = vcmp.gt.f32.partialorder %v1620_v15, 0.0  ;;  %v675_v10 = vpop.permute.xlu1 %674 }
 0x14c   : > { %1253 = vpow2.f32 %v603_v23  ;;  %v607_v28 = vmul.f32 1.442695, %v559_v24  ;;  %v634_v30 = vsel %vm570_vm7, %v1598_v40, %v1102_v22  ;;  %v653_v34 = vpack.c.bf16 %v633_v38, %v631_v36 }
 0x14d   : > { %1255 = vpow2.f32 %v605_v26  ;;  %v609_v32 = vmul.f32 1.442695, %v561_v27  ;;  %v654_v33 = vpack.c.bf16 %v634_v30, %v632_v29  ;;  %vm577_vm14 = vcmp.gt.f32.partialorder %v559_v24, 0.0 }
 0x14e   : > { %v1246_v35 = vpop.eup %1245  ;;  %1257 = vpow2.f32 %v607_v28  ;;  %vm576_vm15 = vcmp.gt.f32.partialorder %v557_v20, 0.0  ;;  %vm578_vm0 = vcmp.gt.f32.partialorder %v561_v27, 0.0 }
 0x14f   : > { %v1248_v39 = vpop.eup %1247  ;;  %v1103_v41 = vadd.f32 -1.0, %v1246_v35  ;;  %1259 = vpow2.f32 %v609_v32  ;;  %742 = vmatprep.subr.bf16.mxu1 %v654_v33  ;;  %v685_v22 = vpop.permute.xlu1 %684 }
 0x150   : > { %v1250_v42 = vpop.eup %1249  ;;  %v1104_v40 = vadd.f32 -1.0, %v1248_v39  ;;  %743 = vmatpush1.bf16.msra.mxu1 %v653_v34 }
 0x151   : > { %v1252_v43 = vpop.eup %1251  ;;  %v1105_v44 = vadd.f32 -1.0, %v1250_v42  ;;  %v635_v31 = vsel %vm571_vm9, %v1602_v48, %v1103_v41 }
 0x152   : > { %v1106_v45 = vadd.f32 -1.0, %v1252_v43  ;;  %v636_v46 = vsel %vm572_vm11, %v1604_v53, %v1104_v40 }
 0x153   : > { %v637_v37 = vsel %vm573_vm10, %v1608_v57, %v1105_v44  ;;  %v695_v43 = vpop.permute.xlu1 %694 }
 0x154   : > { %v638_v47 = vsel %vm574_vm12, %v1611_v62, %v1106_v45  ;;  %v655_v49 = vpack.c.bf16 %v637_v37, %v635_v31 }
 0x155   : > { %v656_v50 = vpack.c.bf16 %v638_v47, %v636_v46 }
 0x156   : > { %v1254_v51 = vpop.eup %1253 }
 0x157   : > { %v1256_v52 = vpop.eup %1255  ;;  %v1107_v54 = vadd.f32 -1.0, %v1254_v51  ;;  %744 = vmatprep.subr.bf16.mxu1 %v656_v50 }
 0x158   : > { %v1258_v55 = vpop.eup %1257  ;;  %v1108_v56 = vadd.f32 -1.0, %v1256_v52  ;;  %745 = vmatpush1.bf16.msra.mxu1 %v655_v49 }
 0x159   : > { %v1260_v58 = vpop.eup %1259  ;;  %v1109_v59 = vadd.f32 -1.0, %v1258_v55  ;;  %v639_v53 = vsel %vm575_vm13, %v1620_v15, %v1107_v54 }
 0x15a   : > { %v1110_v48 = vadd.f32 -1.0, %v1260_v58  ;;  %v640_v60 = vsel %vm576_vm15, %v557_v20, %v1108_v56 }
 0x15b   : > { %v641_v57 = vsel %vm577_vm14, %v559_v24, %v1109_v59 }
 0x15c   : > { %v642_v61 = vsel %vm578_vm0, %v561_v27, %v1110_v48  ;;  %v657_v62 = vpack.c.bf16 %v641_v57, %v639_v53 }
 0x15d   : > { %v658_v63 = vpack.c.bf16 %v642_v61, %v640_v60 }
 0x15f   : > { %746 = vmatprep.subr.bf16.mxu1 %v658_v63 }
 0x160   : > { %747 = vmatpush1.bf16.msra.mxu1 %v657_v62 }
 0x163   : > { %1115 = vmatmul.mubr.msk.bf16.vlgmr.msra.gmra.mrb[0].mxu1 %vm727_vm1, %v1225_v2 }
 0x164   : > { %782 = vmatprep.mubr.bf16.mxu1 %v1361_v1 }
 0x16b   : > { %1116 = vmatmul.mubr.msk.bf16.gmra.mrb[4].mxu1 %vm727_vm1, %v1226_v3 }
 0x16c   : > { %792 = vmatprep.mubr.bf16.mxu1 %v1361_v1 }
 0x173   : > { %1117 = vmatmul.mubr.msk.bf16.gmra.mrb[8].mxu1 %vm727_vm1, %v1227_v4 }
 0x174   : > { %802 = vmatprep.mubr.bf16.mxu1 %v1361_v1 }
 0x17b   : > { %1118 = vmatmul.mubr.msk.bf16.gmra.mrb[12].mxu1 %vm727_vm1, %v1228_v5 }
 0x17c   : > { %943 = vmatprep.mubr.bf16.mxu1 %v1361_v1  ;;  %v680_v1 = vpop.permute.xlu0 %679 }
 0x180   : > { %v690_v36 = vpop.permute.xlu0 %689 }
 0x184   : > { %v700_v61 = vpop.permute.xlu0 %699 }
 0x236   : > { %v774_v7 = vpop.f32.mrb[0].mxu1 }
 0x237   : > { %v775_v8 = vadd.f32 %v774_v7, %v670_v6  ;;  %v776_v9 = vpop.f32.mrb[1].mxu1  ;;  %v705_v7 = vpop.permute.xlu1 %704 }
 0x238   : > { %v1663_v11 = vadd.f32 %v776_v9, %v670_v6  ;;  %v778_v12 = vpop.f32.mrb[2].mxu1 }
 0x239   : > { %v829_v13 = vmul.f32 1.442695, %v775_v8  ;;  %v779_v14 = vadd.f32 %v778_v12, %v675_v10  ;;  %v780_v15 = vpop.f32.mrb[3].mxu1  ;;  %vm813_vm2 = vcmp.gt.f32.partialorder %v775_v8, 0.0 }
 0x23a   : > { %v831_v0 = vmul.f32 1.442695, %v1663_v11  ;;  %v781_v16 = vadd.f32 %v780_v15, %v675_v10  ;;  %vm814_vm4 = vcmp.gt.f32.partialorder %v1663_v11, 0.0 }
 0x23b   : > { %1261 = vpow2.f32 %v829_v13  ;;  %v833_v18 = vmul.f32 1.442695, %v779_v14  ;;  %vm815_vm3 = vcmp.gt.f32.partialorder %v779_v14, 0.0 }
 0x23c   : > { %1263 = vpow2.f32 %v831_v0  ;;  %v835_v19 = vmul.f32 1.442695, %v781_v16  ;;  %vm816_vm5 = vcmp.gt.f32.partialorder %v781_v16, 0.0 }
 0x23d   : > { %1265 = vpow2.f32 %v833_v18 }
 0x23e   : > { %1267 = vpow2.f32 %v835_v19  ;;  %v784_v20 = vpop.f32.mrb[4].mxu1 }
 0x23f   : > { %v1666_v17 = vadd.f32 %v784_v20, %v680_v1  ;;  %v786_v21 = vpop.f32.mrb[5].mxu1 }
 0x240   : > { %v1668_v23 = vadd.f32 %v786_v21, %v680_v1  ;;  %v788_v24 = vpop.f32.mrb[6].mxu1 }
 0x241   : > { %v837_v25 = vmul.f32 1.442695, %v1666_v17  ;;  %v1671_v26 = vadd.f32 %v788_v24, %v685_v22  ;;  %v790_v27 = vpop.f32.mrb[7].mxu1  ;;  %vm817_vm6 = vcmp.gt.f32.partialorder %v1666_v17, 0.0 }
 0x242   : > { %v839_v28 = vmul.f32 1.442695, %v1668_v23  ;;  %v1674_v29 = vadd.f32 %v790_v27, %v685_v22  ;;  %vm818_vm8 = vcmp.gt.f32.partialorder %v1668_v23, 0.0 }
 0x243   : > { %1269 = vpow2.f32 %v837_v25  ;;  %v841_v30 = vmul.f32 1.442695, %v1671_v26  ;;  %vm819_vm7 = vcmp.gt.f32.partialorder %v1671_v26, 0.0 }
 0x244   : > { %1271 = vpow2.f32 %v839_v28  ;;  %v843_v32 = vmul.f32 1.442695, %v1674_v29  ;;  %vm820_vm9 = vcmp.gt.f32.partialorder %v1674_v29, 0.0 }
 0x245   : > { %v1262_v33 = vpop.eup %1261  ;;  %1273 = vpow2.f32 %v841_v30 }
 0x246   : > { %v1264_v35 = vpop.eup %1263  ;;  %v1119_v38 = vadd.f32 -1.0, %v1262_v33  ;;  %1275 = vpow2.f32 %v843_v32  ;;  %v794_v39 = vpop.f32.mrb[8].mxu1 }
 0x247   : > { %v1266_v41 = vpop.eup %1265  ;;  %v1678_v34 = vadd.f32 %v794_v39, %v690_v36  ;;  %v796_v42 = vpop.f32.mrb[9].mxu1  ;;  %v1120_v37 = vadd.f32 -1.0, %v1264_v35 }
 0x248   : > { %v1268_v40 = vpop.eup %1267  ;;  %v1121_v44 = vadd.f32 -1.0, %v1266_v41  ;;  %v1680_v45 = vadd.f32 %v796_v42, %v690_v36  ;;  %v798_v31 = vpop.f32.mrb[10].mxu1  ;;  %v877_v51 = vsel %vm813_vm2, %v775_v8, %v1119_v38 }
 0x249   : > { %v1122_v46 = vadd.f32 -1.0, %v1268_v40  ;;  %v845_v47 = vmul.f32 1.442695, %v1678_v34  ;;  %v1683_v49 = vadd.f32 %v798_v31, %v695_v43  ;;  %v800_v50 = vpop.f32.mrb[11].mxu1  ;;  %v878_v53 = vsel %vm814_vm4, %v1663_v11, %v1120_v37 }
 0x24a   : > { %v879_v52 = vsel %vm815_vm3, %v779_v14, %v1121_v44  ;;  %v847_v54 = vmul.f32 1.442695, %v1680_v45  ;;  %v1686_v55 = vadd.f32 %v800_v50, %v695_v43  ;;  %vm821_vm10 = vcmp.gt.f32.partialorder %v1678_v34, 0.0 }
 0x24b   : > { %v894_v56 = vpack.c.bf16 %v879_v52, %v877_v51  ;;  %1277 = vpow2.f32 %v845_v47  ;;  %v849_v58 = vmul.f32 1.442695, %v1683_v49  ;;  %v880_v57 = vsel %vm816_vm5, %v781_v16, %v1122_v46 }
 0x24c   : > { %1279 = vpow2.f32 %v847_v54  ;;  %v851_v59 = vmul.f32 1.442695, %v1686_v55  ;;  %v895_v2 = vpack.c.bf16 %v880_v57, %v878_v53  ;;  %vm823_vm11 = vcmp.gt.f32.partialorder %v1683_v49, 0.0  ;;  %v893_v54 = vld [vmem:[%s1781_s5] sm:$0x1]  ;;  %v906_v53 = vpop.permute.xlu0 %905 }
 0x24d   : > { %v1270_v48 = vpop.eup %1269  ;;  %1281 = vpow2.f32 %v849_v58  ;;  %vm822_vm12 = vcmp.gt.f32.partialorder %v1680_v45, 0.0  ;;  %vm824_vm13 = vcmp.gt.f32.partialorder %v1686_v55, 0.0  ;;  %v958_v58 = vlaneseq }
 0x24e   : > { %v1272_v60 = vpop.eup %1271  ;;  %v1123_v62 = vadd.f32 -1.0, %v1270_v48  ;;  %1283 = vpow2.f32 %v851_v59  ;;  %v804_v63 = vpop.f32.mrb[12].mxu1  ;;  %911 = vmatprep.subr.bf16.mxu1 %v895_v2 }
 0x24f   : > { %v1274_v3 = vpop.eup %1273  ;;  %v1692_v4 = vadd.f32 %v804_v63, %v700_v61  ;;  %v806_v5 = vpop.f32.mrb[13].mxu1  ;;  %v1124_v11 = vadd.f32 -1.0, %v1272_v60  ;;  %912 = vmatpush1.bf16.msra.mxu1 %v894_v56  ;;  %v959_v48 = vshrl.u32 %v958_v58, 7 }
 0x250   : > { %v1276_v6 = vpop.eup %1275  ;;  %v1125_v8 = vadd.f32 -1.0, %v1274_v3  ;;  %v807_v9 = vadd.f32 %v806_v5, %v700_v61  ;;  %v808_v10 = vpop.f32.mrb[14].mxu1  ;;  %v881_v0 = vsel %vm817_vm6, %v1666_v17, %v1123_v62 }
 0x251   : > { %v1126_v12 = vadd.f32 -1.0, %v1276_v6  ;;  %v853_v13 = vmul.f32 1.442695, %v1692_v4  ;;  %v809_v14 = vadd.f32 %v808_v10, %v705_v7  ;;  %v810_v15 = vpop.f32.mrb[15].mxu1  ;;  %v882_v24 = vsel %vm818_vm8, %v1668_v23, %v1124_v11 }
 0x252   : > { %v883_v16 = vsel %vm819_vm7, %v1671_v26, %v1125_v8  ;;  %v855_v18 = vmul.f32 1.442695, %v807_v9  ;;  %v811_v19 = vadd.f32 %v810_v15, %v705_v7  ;;  %vm825_vm14 = vcmp.gt.f32.partialorder %v1692_v4, 0.0 }
 0x253   : > { %v896_v1 = vpack.c.bf16 %v883_v16, %v881_v0  ;;  %1285 = vpow2.f32 %v853_v13  ;;  %v857_v20 = vmul.f32 1.442695, %v809_v14  ;;  %v884_v25 = vsel %vm820_vm9, %v1674_v29, %v1126_v12 }
 0x254   : > { %1287 = vpow2.f32 %v855_v18  ;;  %v859_v21 = vmul.f32 1.442695, %v811_v19  ;;  %v897_v26 = vpack.c.bf16 %v884_v25, %v882_v24  ;;  %vm827_vm15 = vcmp.gt.f32.partialorder %v809_v14, 0.0 }
 0x255   : > { %v1278_v22 = vpop.eup %1277  ;;  %1289 = vpow2.f32 %v857_v20  ;;  %vm826_vm0 = vcmp.gt.f32.partialorder %v807_v9, 0.0  ;;  %vm828_vm2 = vcmp.gt.f32.partialorder %v811_v19, 0.0 }
 0x256   : > { %v1280_v17 = vpop.eup %1279  ;;  %v1127_v27 = vadd.f32 -1.0, %v1278_v22  ;;  %1291 = vpow2.f32 %v859_v21  ;;  %913 = vmatprep.subr.bf16.mxu1 %v897_v26 }
 0x257   : > { %v1282_v28 = vpop.eup %1281  ;;  %v1128_v30 = vadd.f32 -1.0, %v1280_v17  ;;  %914 = vmatpush1.bf16.msra.mxu1 %v896_v1 }
 0x258   : > { %v1284_v32 = vpop.eup %1283  ;;  %v1129_v33 = vadd.f32 -1.0, %v1282_v28  ;;  %v885_v36 = vsel %vm821_vm10, %v1678_v34, %v1127_v27 }
 0x259   : > { %v1130_v35 = vadd.f32 -1.0, %v1284_v32  ;;  %v886_v38 = vsel %vm822_vm12, %v1680_v45, %v1128_v30 }
 0x25a   : > { %v887_v23 = vsel %vm823_vm11, %v1683_v49, %v1129_v33 }
 0x25b   : > { %v898_v29 = vpack.c.bf16 %v887_v23, %v885_v36  ;;  %v888_v39 = vsel %vm824_vm13, %v1686_v55, %v1130_v35  ;;  %v1362_v55 = vmov 1966171168  }
 0x25c   : > { %v899_v41 = vpack.c.bf16 %v888_v39, %v886_v38  ;;  %v956_v56 = vunpack.c.l.s4 %v1362_v55 }
 0x25d   : > { %v1286_v42 = vpop.eup %1285 }
 0x25e   : > { %v1288_v40 = vpop.eup %1287  ;;  %v1131_v43 = vadd.f32 -1.0, %v1286_v42  ;;  %915 = vmatprep.subr.bf16.mxu1 %v899_v41  ;;  %v957_v59 = vunpack.c.0.s8 %v956_v56 }
 0x25f   : > { %v1290_v44 = vpop.eup %1289  ;;  %v1132_v31 = vadd.f32 -1.0, %v1288_v40  ;;  %916 = vmatpush1.bf16.msra.mxu1 %v898_v29 }
 0x260   : > { %v1292_v34 = vpop.eup %1291  ;;  %v1133_v37 = vadd.f32 -1.0, %v1290_v44  ;;  %v889_v47 = vsel %vm825_vm14, %v1692_v4, %v1131_v43  ;;  %v960_v63 = vsub.s32 %v957_v59, %v959_v48 }
 0x261   : > { %v1134_v46 = vadd.f32 -1.0, %v1292_v34  ;;  %v890_v50 = vsel %vm826_vm0, %v807_v9, %v1132_v31 }
 0x262   : > { %v891_v45 = vsel %vm827_vm15, %v809_v14, %v1133_v37 }
 0x263   : > { %v900_v49 = vpack.c.bf16 %v891_v45, %v889_v47  ;;  %v892_v51 = vsel %vm828_vm2, %v811_v19, %v1134_v46 }
 0x264   : > { %v901_v52 = vpack.c.bf16 %v892_v51, %v890_v50 }
 0x266   : > { %917 = vmatprep.subr.bf16.mxu1 %v901_v52 }
 0x267   : > { %918 = vmatpush1.bf16.msra.mxu1 %v900_v49 }
 0x26a   : > { %1135 = vmatmul.mubr.msk.bf16.vlgmr.msra.gmra.mrb[16].mxu1 %vm727_vm1, %v893_v54  ;;  %vm972_vm1 = vcmp.lt.s32.totalorder %v958_v58, 256 }
 0x33d   : > { %v945_v57 = vpop.f32.mrb[16].mxu1 }
 0x33e   : > { %v946_v60 = vadd.f32 %v945_v57, %v906_v53  ;;  %v947_v61 = vpop.f32.mrb[17].mxu1 }
 0x33f   : > { %v948_v62 = vadd.f32 %v947_v61, %v906_v53  ;;  %v949_v2 = vpop.f32.mrb[18].mxu1 }
 0x340   : > { %v975_v3 = vmul.f32 1.442695, %v946_v60  ;;  %v950_v4 = vpop.f32.mrb[19].mxu1 }
 0x341   : > { %v954_v5 = vcombine.low %v946_v60, %v948_v62  ;;  %v977_v6 = vmul.f32 1.442695, %v948_v62 }
 0x342   : > { %1293 = vpow2.f32 %v975_v3 }
 0x343   : > { %v961_v7 = vrot.slane %v954_v5, %v960_v63  ;;  %1295 = vpow2.f32 %v977_v6 }
 0x345   : > { %v968_v8 = vrot.slane %v961_v7, %v960_v63 }
 0x347   : > { %974 = vst.msk [vmem:[%s284_s23] ss:$2 sm:$0x3] %vm972_vm1, %v968_v8 }
 0x34c   : > { %v1294_v9 = vpop.eup %1293 }
 0x34d   : > { %v1296_v10 = vpop.eup %1295 }
 0x34e   : > { %v981_v11 = vcombine.low %v1294_v9, %v1296_v10 }
 0x350   : > { %v988_v12 = vrot.slane %v981_v11, %v960_v63  ;;  %1007 = sbr.rel (!%p1442_p5) target bundleno = 882 (0x372), region = 52 }
 0x352   : > { %v989_v13 = vcombine.high %v988_v12, %v988_v12 }
 0x354   : > { %v996_v14 = vrot.slane %v989_v13, %v960_v63 }
 0x356   : > { %1136 = vst.msk [vmem:[%s284_s23 + $0x1] ss:$2 sm:$0x3] %vm972_vm1, %v996_v14 }
 0x357   : > { %s1793_s20 = smov (!%p1010_p11, %s1009_s20), 2 }
 0x358   : > { %s1727_s21 = sshll.u32 %s1793_s20, 5 }
 0x359   : > { %s1014_s22 = ssub.s32 64, %s1727_s21 }
 0x35a   : > { %1015 = vsyncadd %s1722_s18, %s1014_s22  ;;  %p1140_p12 = scmp.ne.s32.totalorder %s1727_s21, 0  ;;  %s1146_s29 = sshll.u32 %s1425_s28, 6 }
 0x35b   : > { %s1736_s9 = scalar_lea.hbm %s1783_s7, %s1146_s29  ;;  %s1021_s13 = sshll.u32 %s284_s23, 4  ;;  %s1022_s13 = int_to_ptr.vmem [resolvable:$true] %s1021_s13 }
 0x35c   : > { %s1297_s14 = scalar_lea.vmem %s1022_s13, %s1727_s21  ;;  %s1363_s15 = smov [#allocation2]  }
 0x35d   : > { %p1298_p13 = scmp.ne.s32.totalorder %s1022_s13, %s1297_s14  ;;  %s1301_s16 = sshll.u32 %s1363_s15, 4  ;;  %s1302_s16 = int_to_ptr.vmem [resolvable:$false] %s1301_s16 }
 0x35e   : > { %s1303_s17 = scalar_lea.vmem %s1302_s16, 128  ;;  %p1304_p2 = scmp.lt.s32.totalorder %s1022_s13, %s1302_s16 }
 0x35f   : > { %p1299_p0 = pnand %p1298_p13, %p1140_p12  ;;  %p1305_p3 = scmp.lt.s32.totalorder %s1303_s17, %s1297_s14 }
 0x361   : > { %p1300_p1 = pneg %p1299_p0  ;;  %p1306_p4 = por %p1305_p3, %p1304_p2 }
 0x363   : > { %p1307_p5 = pnand %p1306_p4, %p1300_p1 }
 0x365   : > { %1310 = shalt.err (!%p1307_p5)
}
 0x366   : > { %s1311_s28 = scalar_lea.hbm %s1736_s9, %s1727_s21  ;;  %s1315_s20 = scalar_lea.hbm %s1783_s7, 96 }
 0x367   : > { %p1312_p7 = scmp.ne.s32.totalorder %s1736_s9, %s1311_s28  ;;  %p1316_p10 = scmp.lt.u32.totalorder %s1736_s9, %s1783_s7 }
 0x368   : > { %p1317_p11 = scmp.lt.u32.totalorder %s1315_s20, %s1311_s28  ;;  %p1319_p0 = scmp.lt.u32.totalorder %s1311_s28, %s1736_s9 }
 0x369   : > { %p1313_p8 = pnand %p1312_p7, %p1140_p12 }
 0x36a   : > { %p1318_p13 = por %p1317_p11, %p1316_p10 }
 0x36b   : > { %p1314_p9 = pneg %p1313_p8 }
 0x36c   : > { %p1320_p1 = por %p1319_p0, %p1318_p13 }
 0x36e   : > { %p1321_p2 = pnand %p1320_p1, %p1314_p9 }
 0x370   : > { %1324 = shalt.err (!%p1321_p2)
}
 0x371   : > { %1024 = dma.vmem_to_hbm [thread:$0]  (%p1140_p12), %s1022_s13, %s1727_s21, %s1736_s9, %s1722_s18  }
 0x372 PF: > { %p1184_p3 = scmp.ge.s32.totalorder %s1359_s27, 2  ;;  %s1033_s8 = sand.u32 1, %s1347_s24  }
 0x373   : > { %s1034_s11 = scalar_lea.sflag [#allocation3], %s1033_s8 }
 0x374   : > { %p1181_p4 = pnand %p1184_p3, %p1446_p6 }
 0x376   : > { %1342 = dma.done.wait (!%p1181_p4), %s1034_s11, 64  }
 0x377   : > { %1344 = vsyncadd (!%p1181_p4), %s1034_s11, 4294967232  ;;  %p17_p5 = scmp.ge.s32.totalorder %s1429_s30, 4   ;;  %s1786_s24 = smov %s1351_s25 }
 0x378   : > { %s1787_s25 = smov %s1355_s26  ;;  %s1788_s26 = smov %s1440_s10 }
 0x379   : > { %s1789_s27 = smov %s1429_s30  ;;  %19 = sbr.rel (!%p17_p5) target bundleno = 3 (0x3), region = 84 }
 0x380   :  { %1039 = vsyncpa [#allocation3], 1 }
 0x381   :  { %1041 = vsyncpa [#allocation3 + $0x1], 1 }

</bundles_post_ra>
